<compile_context>
chip_gen: v6e
topology: v6e:2x2x1
jax: 0.10.0
libtpu: 0.0.40
codegen_flags: <defaults>
</compile_context>

<pallas_src>
import jax
import jax.numpy as jnp
from jax.experimental import pallas as pl
from jax.experimental.pallas import tpu as pltpu


# ----------------------------- Pallas kernel ------------------------------ #
def _res_conv_kernel(x_ref, m1_ref, sh1_ref, m2_ref, sh2_ref, o_ref,
                     xp1_ref, xp2_ref):
    """Fully fused res_conv forward for one batch element.

    Lane-dense layout: rows on sublanes, width*channels interleaved on lanes.

      x_ref   : (1, H, W*Cin)   f32   input rows
      m1_ref  : (3, W*Cin,  W*Cout) bf16  conv1 weights (BN scale + x-shift
                                           + x-padding folded)
      sh1_ref : (1, W*Cout)  f32   conv1 folded bias/BN shift (tiled W times)
      m2_ref  : (3, W*Cout, W*Cout) bf16  conv2 weights (same folding)
      sh2_ref : (1, W*Cout)  f32   conv2 folded shift
      o_ref   : (1, H, W*Cout) f32  output rows (full-lane stores)
      xp1_ref : VMEM (H+2, W*Cin)  bf16  row-halo scratch for conv1 input
      xp2_ref : VMEM (H+2, W*Cout) bf16  row-halo scratch holding x1
    """
    H = o_ref.shape[1]
    w_cin = xp1_ref.shape[1]
    w_cout = o_ref.shape[2]

    # ---- conv1: zero halo rows only + 3 lane-dense bf16 MXU matmuls -------
    zero1 = jnp.zeros((1, w_cin), xp1_ref.dtype)
    xp1_ref[pl.ds(0, 1), :] = zero1
    xp1_ref[pl.ds(H + 1, 1), :] = zero1
    xp1_ref[pl.ds(1, H), :] = x_ref[0].astype(xp1_ref.dtype)

    acc1 = jnp.broadcast_to(sh1_ref[...], (H, w_cout))     # init from BN shift
    for ky in range(3):                                     # static unroll
        acc1 = acc1 + jnp.dot(xp1_ref[pl.ds(ky, H), :], m1_ref[ky],
                              preferred_element_type=jnp.float32)
    y1 = jnp.where(acc1 >= 0, acc1, 0.01 * acc1)            # LeakyReLU (0.01)
    # Dropout(0.1) is identity in eval mode.

    # ---- conv2 (+ residual): x1 stays resident on-chip ---------------------
    zero2 = jnp.zeros((1, w_cout), xp2_ref.dtype)
    xp2_ref[pl.ds(0, 1), :] = zero2
    xp2_ref[pl.ds(H + 1, 1), :] = zero2
    xp2_ref[pl.ds(1, H), :] = y1.astype(xp2_ref.dtype)

    acc2 = jnp.broadcast_to(sh2_ref[...], (H, w_cout))
    for ky in range(3):
        acc2 = acc2 + jnp.dot(xp2_ref[pl.ds(ky, H), :], m2_ref[ky],
                              preferred_element_type=jnp.float32)
    y2 = jnp.where(acc2 >= 0, acc2, 0.01 * acc2)

    # Aligned VPU residual add (y1 kept in f32 vregs), full-lane store.
    o_ref[0] = (y2 + y1).astype(o_ref.dtype)


# ------------------------- weight folding (run once) ----------------------- #
def _fold_bn(w_hwio, conv_bias, gamma, beta, rmean, rvar, eps=1e-5):
    """Fold eval-mode BatchNorm (+ conv bias) into a weight scale and a shift."""
    scale = gamma / jnp.sqrt(rvar + eps)                    # (Cout,)
    shift = beta + scale * (conv_bias - rmean)              # (Cout,)
    return w_hwio * scale[None, None, None, :], shift


def _build_row_matrices(w_scaled, width):
    """Fold the 3x3 conv's x-shift AND x-zero-padding into per-ky matrices.

    Returns M of shape (3, W*Cin, W*Cout) such that for activations laid out
    as rows of W*Cin interleaved lanes (no x padding, zero ROW halos only):

        out[h, w*Cout + co] = sum_ky  row[h + ky, :] @ M[ky]

    equals the 3x3 convolution with padding=1 (out-of-range x taps dropped).
    """
    _, _, cin, cout = w_scaled.shape
    kx = jnp.arange(3)[:, None, None]                       # (3, 1, 1)
    col = jnp.arange(width)[None, :, None]                  # (1, W, 1) input col
    wi = jnp.arange(width)[None, None, :]                   # (1, 1, W) output col
    sel = (col == wi + kx - 1).astype(w_scaled.dtype)       # (3, W, W)
    # t[ky, c, ci, w, co] = w_scaled[ky, c - w + 1, ci, co] when in range.
    t = jnp.einsum("xcw,yxio->yciwo", sel, w_scaled)        # (3, W, Cin, W, Cout)
    return t.reshape(3, width * cin, width * cout)


def fold_res_conv_params(params, width):
    """Precompute the banded bf16 weight matrices and f32 shifts ONCE."""
    p1, p2 = params["conv1"], params["conv2"]
    w1s, shift1 = _fold_bn(p1["w"], p1["b"], p1["gamma"], p1["beta"],
                           p1["rmean"], p1["rvar"])
    w2s, shift2 = _fold_bn(p2["w"], p2["b"], p2["gamma"], p2["beta"],
                           p2["rmean"], p2["rvar"])
    return dict(
        m1=_build_row_matrices(w1s, width).astype(jnp.bfloat16),
        m2=_build_row_matrices(w2s, width).astype(jnp.bfloat16),
        sh1=jnp.tile(shift1, width)[None, :].astype(jnp.float32),
        sh2=jnp.tile(shift2, width)[None, :].astype(jnp.float32),
    )


# ------------------------------ wrapper glue ------------------------------ #
def res_conv_forward(folded, x_nchw):
    """x_nchw: (N, Cin, H, W) f32 -> (N, Cout, H, W) f32 (eval mode)."""
    n, cin, h, w = x_nchw.shape
    m1, sh1, m2, sh2 = folded["m1"], folded["sh1"], folded["m2"], folded["sh2"]
    cout = sh1.shape[-1] // w

    # NCHW -> lane-dense rows (N, H, W*Cin); pure layout glue in XLA.
    x_rows = jnp.transpose(x_nchw, (0, 2, 3, 1)).reshape(n, h, w * cin)

    out_rows = pl.pallas_call(
        _res_conv_kernel,
        out_shape=jax.ShapeDtypeStruct((n, h, w * cout), jnp.float32),
        grid_spec=pltpu.PrefetchScalarGridSpec(
            num_scalar_prefetch=0,
            grid=(n,),                              # batch axis; v7x -> 2 TCs
            in_specs=[
                pl.BlockSpec((1, h, w * cin), lambda b: (b, 0, 0)),
                pl.BlockSpec((3, w * cin, w * cout), lambda b: (0, 0, 0)),
                pl.BlockSpec((1, w * cout), lambda b: (0, 0)),
                pl.BlockSpec((3, w * cout, w * cout), lambda b: (0, 0, 0)),
                pl.BlockSpec((1, w * cout), lambda b: (0, 0)),
            ],
            out_specs=pl.BlockSpec((1, h, w * cout), lambda b: (b, 0, 0)),
            scratch_shapes=[
                pltpu.VMEM((h + 2, w * cin), jnp.bfloat16),
                pltpu.VMEM((h + 2, w * cout), jnp.bfloat16),
            ],
        ),
        compiler_params=pltpu.CompilerParams(
            dimension_semantics=("parallel",)),
    )(x_rows, m1, sh1, m2, sh2)

    # lane-dense rows -> NCHW
    return jnp.transpose(out_rows.reshape(n, h, w, cout), (0, 3, 1, 2))


# ------------------------- params & pure-JAX reference --------------------- #
def init_res_conv_params(key, input_channels, output_channels):
    """Deterministic parameter init mirroring the shapes in res_conv.__init__."""
    k1, k2, k3, k4 = jax.random.split(key, 4)
    cin, cout = input_channels, output_channels

    def conv_block(kw, kb, cin_):
        fan_in = cin_ * 9
        w = jax.random.normal(kw, (3, 3, cin_, cout), jnp.float32) / jnp.sqrt(fan_in)
        b = 0.01 * jax.random.normal(kb, (cout,), jnp.float32)
        gamma = jnp.ones((cout,), jnp.float32) * 1.1
        beta = jnp.full((cout,), 0.05, jnp.float32)
        rmean = jnp.full((cout,), 0.02, jnp.float32)
        rvar = jnp.ones((cout,), jnp.float32) * 0.9
        return dict(w=w, b=b, gamma=gamma, beta=beta, rmean=rmean, rvar=rvar)

    return dict(conv1=conv_block(k1, k2, cin), conv2=conv_block(k3, k4, cout))


def _reference_forward(params, x_nchw, eps=1e-5):
    """Pure-JAX f32 eval-mode reference (correctness check only)."""
    def block(p, x):
        w_oihw = jnp.transpose(p["w"], (3, 2, 0, 1))
        y = jax.lax.conv_general_dilated(
            x, w_oihw, window_strides=(1, 1), padding=((1, 1), (1, 1)),
            dimension_numbers=("NCHW", "OIHW", "NCHW"),
            precision=jax.lax.Precision.HIGHEST)
        y = y + p["b"][None, :, None, None]
        y = (y - p["rmean"][None, :, None, None]) * (
            p["gamma"][None, :, None, None]
            / jnp.sqrt(p["rvar"][None, :, None, None] + eps))
        y = y + p["beta"][None, :, None, None]
        return jnp.where(y >= 0, y, 0.01 * y)

    x1 = block(params["conv1"], x_nchw)
    return block(params["conv2"], x1) + x1


# --------------------------------- main ----------------------------------- #
if __name__ == "__main__":
    key = jax.random.PRNGKey(0)
    kx, kp = jax.random.split(key)

    N, Cin, Cout, H, W = 2, 4, 8, 16, 16
    x = jax.random.normal(kx, (N, Cin, H, W), jnp.float32)
    params = init_res_conv_params(kp, Cin, Cout)

    # Weight folding hoisted out of the forward: done once here.
    folded = fold_res_conv_params(params, W)
    folded = jax.tree_util.tree_map(jnp.asarray, folded)

    fwd = jax.jit(res_conv_forward)
    out = fwd(folded, x)
    jax.block_until_ready(out)
    assert out.shape == (N, Cout, H, W), out.shape

    ref = _reference_forward(params, x)
    err = float(jnp.max(jnp.abs(out - ref)))
    # bf16 weights/activations with f32 accumulation: ~1% relative error budget.
    assert err < 3e-2, f"max abs error vs f32 reference: {err}"

    print("KERNEL_OK")
</pallas_src>

<mosaic_0001>
module attributes {stable_mosaic.version = 11 : i64} {
  func.func @_res_conv_kernel(%arg0: i32, %arg1: memref<1x16x64xf32, #tpu.memory_space<vmem>>, %arg2: memref<3x64x128xbf16, #tpu.memory_space<vmem>>, %arg3: memref<1x128xf32, #tpu.memory_space<vmem>>, %arg4: memref<3x128x128xbf16, #tpu.memory_space<vmem>>, %arg5: memref<1x128xf32, #tpu.memory_space<vmem>>, %arg6: memref<1x16x128xf32, #tpu.memory_space<vmem>>, %arg7: memref<18x64xbf16, #tpu.memory_space<vmem>>, %arg8: memref<18x128xbf16, #tpu.memory_space<vmem>>) attributes {dimension_semantics = [#tpu.dimension_semantics<parallel>], iteration_bounds = array<i64: 2>, scalar_prefetch = 0 : i64, scratch_operands = 2 : i64, tpu.core_type = #tpu.core_type<tc>, window_params = [{transform_indices = @transform_0, window_bounds = array<i64: 1, 16, 64>}, {pipeline_mode = #tpu.pipeline_mode<synchronous>, transform_indices = @transform_1, window_bounds = array<i64: 3, 64, 128>}, {pipeline_mode = #tpu.pipeline_mode<synchronous>, transform_indices = @transform_2, window_bounds = array<i64: 1, 128>}, {pipeline_mode = #tpu.pipeline_mode<synchronous>, transform_indices = @transform_3, window_bounds = array<i64: 3, 128, 128>}, {pipeline_mode = #tpu.pipeline_mode<synchronous>, transform_indices = @transform_4, window_bounds = array<i64: 1, 128>}, {transform_indices = @transform_5, window_bounds = array<i64: 1, 16, 128>}]} {
    %cst = arith.constant 0.000000e+00 : bf16
    %0 = vector.broadcast %cst : bf16 to vector<1x64xbf16>
    %c0 = arith.constant 0 : index
    %c0_0 = arith.constant 0 : index
    %1 = vector.load %arg7[%c0, %c0_0] : memref<18x64xbf16, #tpu.memory_space<vmem>>, vector<1x64xbf16>
    tpu.vector_store %arg7[%c0, %c0_0], %0 {strides = array<i32>} : memref<18x64xbf16, #tpu.memory_space<vmem>>, vector<1x64xbf16>,
    %c17 = arith.constant 17 : index
    %c0_1 = arith.constant 0 : index
    %2 = vector.load %arg7[%c17, %c0_1] : memref<18x64xbf16, #tpu.memory_space<vmem>>, vector<1x64xbf16>
    tpu.vector_store %arg7[%c17, %c0_1], %0 {strides = array<i32>} : memref<18x64xbf16, #tpu.memory_space<vmem>>, vector<1x64xbf16>,
    %c0_2 = arith.constant 0 : index
    %c0_3 = arith.constant 0 : index
    %c0_4 = arith.constant 0 : index
    %3 = vector.load %arg1[%c0_2, %c0_3, %c0_4] : memref<1x16x64xf32, #tpu.memory_space<vmem>>, vector<1x16x64xf32>
    %4 = vector.shape_cast %3 : vector<1x16x64xf32> to vector<16x64xf32>
    %5 = arith.truncf %4 : vector<16x64xf32> to vector<16x64xbf16>
    %c1 = arith.constant 1 : index
    %c0_5 = arith.constant 0 : index
    %6 = vector.load %arg7[%c1, %c0_5] : memref<18x64xbf16, #tpu.memory_space<vmem>>, vector<16x64xbf16>
    tpu.vector_store %arg7[%c1, %c0_5], %5 {strides = array<i32>} : memref<18x64xbf16, #tpu.memory_space<vmem>>, vector<16x64xbf16>,
    %c0_6 = arith.constant 0 : index
    %c0_7 = arith.constant 0 : index
    %7 = vector.load %arg3[%c0_6, %c0_7] : memref<1x128xf32, #tpu.memory_space<vmem>>, vector<1x128xf32>
    %8 = vector.shape_cast %7 : vector<1x128xf32> to vector<1x128xf32>
    %9 = vector.broadcast %8 : vector<1x128xf32> to vector<16x128xf32>
    %c0_8 = arith.constant 0 : index
    %c0_9 = arith.constant 0 : index
    %10 = vector.load %arg7[%c0_8, %c0_9] : memref<18x64xbf16, #tpu.memory_space<vmem>>, vector<16x64xbf16>
    %c0_10 = arith.constant 0 : index
    %c0_11 = arith.constant 0 : index
    %c0_12 = arith.constant 0 : index
    %11 = vector.load %arg2[%c0_10, %c0_11, %c0_12] : memref<3x64x128xbf16, #tpu.memory_space<vmem>>, vector<1x64x128xbf16>
    %12 = vector.shape_cast %11 : vector<1x64x128xbf16> to vector<64x128xbf16>
    %cst_13 = arith.constant dense<0.000000e+00> : vector<16x128xf32>
    %13 = tpu.matmul %10, %12, %cst_13 {dimension_numbers = #tpu.dot_dimension_numbers<[1], [0], [0], [1], [0, 0, 1, 1], [], []>} : vector<16x64xbf16>, vector<64x128xbf16>, vector<16x128xf32> -> vector<16x128xf32>
    %14 = arith.addf %9, %13 : vector<16x128xf32>
    %c1_14 = arith.constant 1 : index
    %c0_15 = arith.constant 0 : index
    %15 = vector.load %arg7[%c1_14, %c0_15] : memref<18x64xbf16, #tpu.memory_space<vmem>>, vector<16x64xbf16>
    %c1_16 = arith.constant 1 : index
    %c0_17 = arith.constant 0 : index
    %c0_18 = arith.constant 0 : index
    %16 = vector.load %arg2[%c1_16, %c0_17, %c0_18] : memref<3x64x128xbf16, #tpu.memory_space<vmem>>, vector<1x64x128xbf16>
    %17 = vector.shape_cast %16 : vector<1x64x128xbf16> to vector<64x128xbf16>
    %cst_19 = arith.constant dense<0.000000e+00> : vector<16x128xf32>
    %18 = tpu.matmul %15, %17, %cst_19 {dimension_numbers = #tpu.dot_dimension_numbers<[1], [0], [0], [1], [0, 0, 1, 1], [], []>} : vector<16x64xbf16>, vector<64x128xbf16>, vector<16x128xf32> -> vector<16x128xf32>
    %19 = arith.addf %14, %18 : vector<16x128xf32>
    %c2 = arith.constant 2 : index
    %c0_20 = arith.constant 0 : index
    %20 = vector.load %arg7[%c2, %c0_20] : memref<18x64xbf16, #tpu.memory_space<vmem>>, vector<16x64xbf16>
    %c2_21 = arith.constant 2 : index
    %c0_22 = arith.constant 0 : index
    %c0_23 = arith.constant 0 : index
    %21 = vector.load %arg2[%c2_21, %c0_22, %c0_23] : memref<3x64x128xbf16, #tpu.memory_space<vmem>>, vector<1x64x128xbf16>
    %22 = vector.shape_cast %21 : vector<1x64x128xbf16> to vector<64x128xbf16>
    %cst_24 = arith.constant dense<0.000000e+00> : vector<16x128xf32>
    %23 = tpu.matmul %20, %22, %cst_24 {dimension_numbers = #tpu.dot_dimension_numbers<[1], [0], [0], [1], [0, 0, 1, 1], [], []>} : vector<16x64xbf16>, vector<64x128xbf16>, vector<16x128xf32> -> vector<16x128xf32>
    %24 = arith.addf %19, %23 : vector<16x128xf32>
    %cst_25 = arith.constant 0.000000e+00 : f32
    %25 = vector.broadcast %cst_25 : f32 to vector<16x128xf32>
    %26 = arith.cmpf oge, %24, %25 : vector<16x128xf32>
    %cst_26 = arith.constant 0.00999999977 : f32
    %27 = vector.broadcast %cst_26 : f32 to vector<16x128xf32>
    %28 = arith.mulf %27, %24 : vector<16x128xf32>
    %29 = arith.select %26, %24, %28 : vector<16x128xi1>, vector<16x128xf32>
    %cst_27 = arith.constant 0.000000e+00 : bf16
    %30 = vector.broadcast %cst_27 : bf16 to vector<1x128xbf16>
    %c0_28 = arith.constant 0 : index
    %c0_29 = arith.constant 0 : index
    %31 = vector.load %arg8[%c0_28, %c0_29] : memref<18x128xbf16, #tpu.memory_space<vmem>>, vector<1x128xbf16>
    tpu.vector_store %arg8[%c0_28, %c0_29], %30 {strides = array<i32>} : memref<18x128xbf16, #tpu.memory_space<vmem>>, vector<1x128xbf16>,
    %c17_30 = arith.constant 17 : index
    %c0_31 = arith.constant 0 : index
    %32 = vector.load %arg8[%c17_30, %c0_31] : memref<18x128xbf16, #tpu.memory_space<vmem>>, vector<1x128xbf16>
    tpu.vector_store %arg8[%c17_30, %c0_31], %30 {strides = array<i32>} : memref<18x128xbf16, #tpu.memory_space<vmem>>, vector<1x128xbf16>,
    %33 = arith.truncf %29 : vector<16x128xf32> to vector<16x128xbf16>
    %c1_32 = arith.constant 1 : index
    %c0_33 = arith.constant 0 : index
    %34 = vector.load %arg8[%c1_32, %c0_33] : memref<18x128xbf16, #tpu.memory_space<vmem>>, vector<16x128xbf16>
    tpu.vector_store %arg8[%c1_32, %c0_33], %33 {strides = array<i32>} : memref<18x128xbf16, #tpu.memory_space<vmem>>, vector<16x128xbf16>,
    %c0_34 = arith.constant 0 : index
    %c0_35 = arith.constant 0 : index
    %35 = vector.load %arg5[%c0_34, %c0_35] : memref<1x128xf32, #tpu.memory_space<vmem>>, vector<1x128xf32>
    %36 = vector.shape_cast %35 : vector<1x128xf32> to vector<1x128xf32>
    %37 = vector.broadcast %36 : vector<1x128xf32> to vector<16x128xf32>
    %c0_36 = arith.constant 0 : index
    %c0_37 = arith.constant 0 : index
    %38 = vector.load %arg8[%c0_36, %c0_37] : memref<18x128xbf16, #tpu.memory_space<vmem>>, vector<16x128xbf16>
    %c0_38 = arith.constant 0 : index
    %c0_39 = arith.constant 0 : index
    %c0_40 = arith.constant 0 : index
    %39 = vector.load %arg4[%c0_38, %c0_39, %c0_40] : memref<3x128x128xbf16, #tpu.memory_space<vmem>>, vector<1x128x128xbf16>
    %40 = vector.shape_cast %39 : vector<1x128x128xbf16> to vector<128x128xbf16>
    %cst_41 = arith.constant dense<0.000000e+00> : vector<16x128xf32>
    %41 = tpu.matmul %38, %40, %cst_41 {dimension_numbers = #tpu.dot_dimension_numbers<[1], [0], [0], [1], [0, 0, 1, 1], [], []>} : vector<16x128xbf16>, vector<128x128xbf16>, vector<16x128xf32> -> vector<16x128xf32>
    %42 = arith.addf %37, %41 : vector<16x128xf32>
    %c1_42 = arith.constant 1 : index
    %c0_43 = arith.constant 0 : index
    %43 = vector.load %arg8[%c1_42, %c0_43] : memref<18x128xbf16, #tpu.memory_space<vmem>>, vector<16x128xbf16>
    %c1_44 = arith.constant 1 : index
    %c0_45 = arith.constant 0 : index
    %c0_46 = arith.constant 0 : index
    %44 = vector.load %arg4[%c1_44, %c0_45, %c0_46] : memref<3x128x128xbf16, #tpu.memory_space<vmem>>, vector<1x128x128xbf16>
    %45 = vector.shape_cast %44 : vector<1x128x128xbf16> to vector<128x128xbf16>
    %cst_47 = arith.constant dense<0.000000e+00> : vector<16x128xf32>
    %46 = tpu.matmul %43, %45, %cst_47 {dimension_numbers = #tpu.dot_dimension_numbers<[1], [0], [0], [1], [0, 0, 1, 1], [], []>} : vector<16x128xbf16>, vector<128x128xbf16>, vector<16x128xf32> -> vector<16x128xf32>
    %47 = arith.addf %42, %46 : vector<16x128xf32>
    %c2_48 = arith.constant 2 : index
    %c0_49 = arith.constant 0 : index
    %48 = vector.load %arg8[%c2_48, %c0_49] : memref<18x128xbf16, #tpu.memory_space<vmem>>, vector<16x128xbf16>
    %c2_50 = arith.constant 2 : index
    %c0_51 = arith.constant 0 : index
    %c0_52 = arith.constant 0 : index
    %49 = vector.load %arg4[%c2_50, %c0_51, %c0_52] : memref<3x128x128xbf16, #tpu.memory_space<vmem>>, vector<1x128x128xbf16>
    %50 = vector.shape_cast %49 : vector<1x128x128xbf16> to vector<128x128xbf16>
    %cst_53 = arith.constant dense<0.000000e+00> : vector<16x128xf32>
    %51 = tpu.matmul %48, %50, %cst_53 {dimension_numbers = #tpu.dot_dimension_numbers<[1], [0], [0], [1], [0, 0, 1, 1], [], []>} : vector<16x128xbf16>, vector<128x128xbf16>, vector<16x128xf32> -> vector<16x128xf32>
    %52 = arith.addf %47, %51 : vector<16x128xf32>
    %cst_54 = arith.constant 0.000000e+00 : f32
    %53 = vector.broadcast %cst_54 : f32 to vector<16x128xf32>
    %54 = arith.cmpf oge, %52, %53 : vector<16x128xf32>
    %cst_55 = arith.constant 0.00999999977 : f32
    %55 = vector.broadcast %cst_55 : f32 to vector<16x128xf32>
    %56 = arith.mulf %55, %52 : vector<16x128xf32>
    %57 = arith.select %54, %52, %56 : vector<16x128xi1>, vector<16x128xf32>
    %58 = arith.addf %57, %29 : vector<16x128xf32>
    %c0_56 = arith.constant 0 : index
    %c0_57 = arith.constant 0 : index
    %c0_58 = arith.constant 0 : index
    %59 = vector.load %arg6[%c0_56, %c0_57, %c0_58] : memref<1x16x128xf32, #tpu.memory_space<vmem>>, vector<1x16x128xf32>
    %60 = vector.shape_cast %59 : vector<1x16x128xf32> to vector<16x128xf32>
    %61 = vector.shape_cast %58 : vector<16x128xf32> to vector<1x16x128xf32>
    tpu.vector_store %arg6[%c0_56, %c0_57, %c0_58], %61 {strides = array<i32>} : memref<1x16x128xf32, #tpu.memory_space<vmem>>, vector<1x16x128xf32>,
    return
  }
  func.func @transform_0(%arg0: i32) -> (i32, i32, i32) {
    %c0_i32 = arith.constant 0 : i32
    %c0_i32_0 = arith.constant 0 : i32
    %c0_i32_1 = arith.constant 0 : i32
    return %arg0, %c0_i32, %c0_i32_0 : i32, i32, i32
  }
  func.func @transform_1(%arg0: i32) -> (i32, i32, i32) {
    %c0_i32 = arith.constant 0 : i32
    %c0_i32_0 = arith.constant 0 : i32
    %c0_i32_1 = arith.constant 0 : i32
    %c0_i32_2 = arith.constant 0 : i32
    return %c0_i32, %c0_i32_0, %c0_i32_1 : i32, i32, i32
  }
  func.func @transform_2(%arg0: i32) -> (i32, i32) {
    %c0_i32 = arith.constant 0 : i32
    %c0_i32_0 = arith.constant 0 : i32
    %c0_i32_1 = arith.constant 0 : i32
    return %c0_i32, %c0_i32_0 : i32, i32
  }
  func.func @transform_3(%arg0: i32) -> (i32, i32, i32) {
    %c0_i32 = arith.constant 0 : i32
    %c0_i32_0 = arith.constant 0 : i32
    %c0_i32_1 = arith.constant 0 : i32
    %c0_i32_2 = arith.constant 0 : i32
    return %c0_i32, %c0_i32_0, %c0_i32_1 : i32, i32, i32
  }
  func.func @transform_4(%arg0: i32) -> (i32, i32) {
    %c0_i32 = arith.constant 0 : i32
    %c0_i32_0 = arith.constant 0 : i32
    %c0_i32_1 = arith.constant 0 : i32
    return %c0_i32, %c0_i32_0 : i32, i32
  }
  func.func @transform_5(%arg0: i32) -> (i32, i32, i32) {
    %c0_i32 = arith.constant 0 : i32
    %c0_i32_0 = arith.constant 0 : i32
    %c0_i32_1 = arith.constant 0 : i32
    return %arg0, %c0_i32, %c0_i32_0 : i32, i32, i32
  }
}

</mosaic_0001>

<bundles_post_ra>
// kernel: res_conv_forward.1
= control target key start
LH: loop header
LB: loop body
LE: loop exit
PB: predicated region body
PF: predicated region fallthrough
CT: control target
= control target key end

     0   :  { %s1395_s18 = smov 0   ;;  %s1645_s0 = inlined_call_operand.vmem [shape: f32[2,16,64], index: 0, kind: input, shape index: {}]   ;;  %s1646_s1 = inlined_call_operand.vmem [shape: bf16[3,64,128], index: 1, kind: input, shape index: {}]   ;;  %s1647_s2 = inlined_call_operand.vmem [shape: f32[1,128], index: 2, kind: input, shape index: {}]   ;;  %s1648_s3 = inlined_call_operand.vmem [shape: bf16[3,128,128], index: 3, kind: input, shape index: {}]   ;;  %s1649_s4 = inlined_call_operand.vmem [shape: f32[1,128], index: 4, kind: input, shape index: {}]   ;;  %s1650_s5 = inlined_call_operand.vmem [shape: f32[2,16,128], index: 5, kind: output, shape index: {}]  }
   0x1 LB: > { %s1045_s19 = sadd.s32 4294967295, %s1361_s18   ;;  %p1049_p0 = scmp.ge.s32.totalorder %s1361_s18, 1  ;;  %s1361_s18 = sphi %s1395_s18, %s15_s18  }
   0x2   : > { %p187_p1 = scmp.lt.s32.totalorder %s1361_s18, 3 }
   0x4   : > { %p188_p2 = pnand %p1049_p0, %p187_p1 }
   0x5   : > { %p215_p3 = scmp.lt.s32.totalorder (!%p188_p2), %s1045_s19, 1 }
   0x6   : > { %191 = sbr.rel (%p188_p2) target bundleno = 504 (0x1f8), region = 40 }
   0xb   : > { %v1311_v0 = vld [vmem:[%s1646_s1 + $0x18] sm:$0xff]   ;;  %v1363_v1 = vmov 0.0   ;;  %v1312_v2 = vld [vmem:[%s1646_s1 + $0x10] sm:$0xff]   ;;  %vm1364_vm0 = vmmov 0   ;;  %s1662_s19 = smov (!%p215_p3, %s1045_s19), 1  ;;  %vm226_vm1 = vcmask 516096  }
   0xc   : > { %1205 = vmatprep.subr.bf16.mxu0 %v1363_v1  ;;  %1217 = vmatprep.subr.bf16.mxu1 %v1363_v1  ;;  %v1314_v3 = vld [vmem:[%s1646_s1 + $0x38] sm:$0xff]   ;;  %v1316_v4 = vld [vmem:[%s1646_s1 + $0x30] sm:$0xff]   ;;  %v1313_v5 = vld [vmem:[%s1646_s1 + $0x8] sm:$0xff]   ;;  %s1157_s30 = sshll.u32 %s1662_s19, 4  ;;  %vm227_vm2 = vsmask.f32 256 }
   0xd   : > { %1206 = vmatpush3.bf16.msra.mxu0 %v1311_v0  ;;  %1213 = vmatprep.mubr.msk.bf16.mxu0 %vm1364_vm0, %v1363_v1  ;;  %v229_v6 = vld [vmem:[#allocation2] sm:$0x1]  ;;  %s219_s8 = scalar_lea.vmem %s1645_s0, %s1157_s30  ;;  %vm1437_vm3 = vmand %vm226_vm1, %vm227_vm2  ;;  %vm232_vm4 = vsmask.f32 7938  ;;  %vm245_vm5 = vsmask.f32 4368  ;;  %s224_s11 = scalar_lea.vmem %s1650_s5, %s1157_s30 }
   0xe   : > { %1207 = vmatprep.subr.bf16.mxu0 %v1363_v1  ;;  %1225 = vmatprep.mubr.msk.bf16.mxu1 %vm1364_vm0, %v1363_v1  ;;  %v230_v8 = vsel %vm1437_vm3, 0, %v229_v6  ;;  %v237_v9 = vld [vmem:[%s219_s8] sm:$0xff]  ;;  %v238_v10 = vld [vmem:[%s219_s8 + $0x8] sm:$0xff]  ;;  %vm1452_vm6 = vmand %vm226_vm1, %vm232_vm4  ;;  %vm267_vm7 = vcmask 519168   ;;  %vm323_vm10 = vcmask 523264   ;;  %vm486_vm12 = vcmask 1046528  }
   0xf   : > { %1218 = vmatpush3.bf16.msra.mxu1 %v1314_v3  ;;  %v1315_v11 = vld [vmem:[%s1646_s1] sm:$0xff]   ;;  %231 = vst [vmem:[#allocation2] sm:$0x1] %v230_v8  ;;  %v1159_v12 = vpack.c.bf16 %v237_v9, %v237_v9  ;;  %v1160_v13 = vpack.c.bf16 %v238_v10, %v238_v10  ;;  %v1318_v14 = vld [vmem:[%s1646_s1 + $0x28] sm:$0xff]   ;;  %vm1458_vm8 = vmor %vm227_vm2, %vm245_vm5  ;;  %vm390_vm11 = vsmask.f32 7424 }
  0x10   : > { %1219 = vmatprep.subr.bf16.mxu1 %v1363_v1  ;;  %vm1464_vm9 = vmand %vm267_vm7, %vm232_vm4  ;;  %v1320_v24 = vld [vmem:[%s1646_s1 + $0x20] sm:$0xff]   ;;  %v234_v25 = vld [vmem:[#allocation2 + $0x8] sm:$0x1]  ;;  %vm566_vm13 = vcmask 1040384  }
  0x11   : > { %1208 = vmatpush3.bf16.msra.mxu0 %v1312_v2  ;;  %v248_v17 = vshrl.u32 %v1159_v12, 16  ;;  %v251_v18 = vshll.u32 %v1159_v12, 16  ;;  %v256_v19 = vshrl.u32 %v1160_v13, 16  ;;  %v259_v20 = vshll.u32 %v1160_v13, 16  ;;  %v1319_v34 = vld [vmem:[%s1646_s1 + $0x58] sm:$0xff]   ;;  %v1321_v38 = vld [vmem:[%s1646_s1 + $0x50] sm:$0xff]   ;;  %vm1519_vm14 = vmand %vm566_vm13, %vm227_vm2 }
  0x12   : > { %1209 = vmatprep.subr.bf16.mxu0 %v1363_v1  ;;  %v235_v31 = vsel %vm1452_vm6, 0, %v234_v25  ;;  %v1324_v45 = vld [vmem:[%s1646_s1 + $0x48] sm:$0xff]   ;;  %v1325_v50 = vld [vmem:[%s1646_s1 + $0x40] sm:$0xff]   ;;  %v1327_v57 = vld [vmem:[%s1648_s3 + $0x38] sm:$0xff]  }
  0x13   : > { %1220 = vmatpush3.bf16.msra.mxu1 %v1316_v4  ;;  %v250_v21 = vrot.slane %v248_v17, 7  ;;  %v258_v22 = vrot.slane %v256_v19, 7  ;;  %236 = vst [vmem:[#allocation2 + $0x8] sm:$0x1] %v235_v31  ;;  %v1328_v58 = vld [vmem:[%s1648_s3 + $0x30] sm:$0xff]   ;;  %v1329_v61 = vld [vmem:[%s1648_s3 + $0x28] sm:$0xff]   ;;  %vm571_vm15 = vmand %vm566_vm13, %vm232_vm4 }
  0x14   : > { %1221 = vmatprep.subr.bf16.mxu1 %v1363_v1  ;;  %v568_v59 = vld [vmem:[#allocation3] sm:$0x1]  ;;  %v1330_v63 = vld [vmem:[%s1648_s3 + $0x78] sm:$0xff]   ;;  %v1331_v0 = vld [vmem:[%s1648_s3 + $0x20] sm:$0xff]  }
  0x15   : > { %1210 = vmatpush3.bf16.msra.mxu0 %v1313_v5  ;;  %v253_v26 = vor.u32 %v251_v18, %v250_v21  ;;  %v254_v27 = vrot.slane %v250_v21, 4  ;;  %v261_v28 = vor.u32 %v259_v20, %v258_v22  ;;  %v263_v29 = vrot.slane %v258_v22, 4  ;;  %v1332_v2 = vld [vmem:[%s1648_s3 + $0x70] sm:$0xff]   ;;  %v1333_v5 = vld [vmem:[%s1648_s3 + $0x18] sm:$0xff]   ;;  %v1334_v6 = vld [vmem:[%s1648_s3 + $0x68] sm:$0xff]  }
  0x16   : > { %1211 = vmatprep.subr.bf16.mxu0 %v1363_v1  ;;  %v269_v30 = vld [vmem:[#allocation2] sm:$0xf]  ;;  %v569_v62 = vsel %vm1519_vm14, 0, %v568_v59  ;;  %v572_v3 = vld [vmem:[#allocation3 + $0x8] sm:$0x1]  ;;  %v1337_v9 = vld [vmem:[%s1648_s3 + $0x8] sm:$0xff]  }
  0x17   : > { %1222 = vmatpush3.bf16.msra.mxu1 %v1318_v14  ;;  %v262_v32 = vsel %vm1458_vm8, %v254_v27, %v261_v28  ;;  %v270_v33 = vsel %vm1464_vm9, %v253_v26, %v269_v30  ;;  %570 = vst [vmem:[#allocation3] sm:$0x1] %v569_v62  ;;  %v573_v4 = vsel %vm571_vm15, 0, %v572_v3  ;;  %v1335_v7 = vld [vmem:[%s1648_s3 + $0x10] sm:$0xff]   ;;  %v1336_v8 = vld [vmem:[%s1648_s3 + $0x60] sm:$0xff]   ;;  %v1338_v10 = vld [vmem:[%s1648_s3 + $0x58] sm:$0xff]  }
  0x18   : > { %1223 = vmatprep.subr.bf16.mxu1 %v1363_v1  ;;  %271 = vst [vmem:[#allocation2] sm:$0xf] %v270_v33  ;;  %273 = vst.msk [vmem:[#allocation2 + $0x4] sm:$0xf] %vm267_vm7, %v262_v32  ;;  %v1340_v12 = vld [vmem:[%s1648_s3 + $0x50] sm:$0xff]   ;;  %v1342_v13 = vld [vmem:[%s1648_s3 + $0x48] sm:$0xff]  }
  0x19   : > { %1212 = vmatpush3.bf16.msra.mxu0 %v1315_v11  ;;  %574 = vst [vmem:[#allocation3 + $0x8] sm:$0x1] %v573_v4  ;;  %v1339_v11 = vld [vmem:[%s1648_s3] sm:$0xff]   ;;  %v1345_v16 = vld [vmem:[%s1648_s3 + $0xb0] sm:$0xff]  }
  0x1a   : > { %1229 = vmatprep.subr.bf16.mxu0 %v1363_v1  ;;  %v274_v35 = vld [vmem:[#allocation2 + $0x8] sm:$0x1]  ;;  %v1344_v14 = vld [vmem:[%s1648_s3 + $0x40] sm:$0xff]  }
  0x1b   : > { %1224 = vmatpush3.bf16.msra.mxu1 %v1320_v24  ;;  %v275_v37 = vsel %vm1437_vm3, %v263_v29, %v274_v35  ;;  %v1056_v20 = vld [vmem:[%s1647_s2] ss:$0 sm:$0xff]  ;;  %vm601_vm3 = vcmask 1043456  }
  0x1c   : > { %1241 = vmatprep.subr.bf16.mxu1 %v1363_v1  ;;  %276 = vst [vmem:[#allocation2 + $0x8] sm:$0x1] %v275_v37  ;;  %vm602_vm5 = vmand %vm601_vm3, %vm232_vm4 }
  0x1f   : > { %v1317_v36 = vld [vmem:[#allocation2] sm:$0xff]  }
  0x20   : > { %v370_v39 = vld [vmem:[#allocation2] sm:$0xf]  ;;  %v371_v40 = vld [vmem:[#allocation2 + $0x4] sm:$0xf]  ;;  %1214 = vmatmul.mubr.msk.bf16.vlgmr.msra.gmra.mxu0 %vm323_vm10, %v1317_v36 }
  0x21   : > { %v473_v41 = vld [vmem:[#allocation2] sm:$0xe]  ;;  %v1071_v42 = vcombine.low %v370_v39, %v371_v40  ;;  %1230 = vmatpush3.bf16.msra.mxu0 %v1319_v34  ;;  %1237 = vmatprep.mubr.msk.bf16.mxu0 %vm1364_vm0, %v1363_v1 }
  0x22   : > { %1231 = vmatprep.subr.bf16.mxu0 %v1363_v1  ;;  %v1086_v44 = vcombine.low %v473_v41, %v371_v40 }
  0x23   : > { %v394_v43 = vshll.u32 %v1071_v42, 16  ;;  %v392_v46 = vshrl.u32 %v1071_v42, 16  ;;  %v1323_v48 = vld [vmem:[#allocation2 + $0x8] ss:$0 sps:$4 sm:$0x11]  }
  0x24   : > { %v487_v49 = vrot.slane %v1086_v44, 1  ;;  %v399_v52 = vshll.u32 %v1323_v48, 16  ;;  %v488_v53 = vrot.slane %v1323_v48, 1  ;;  %v603_v44 = vld [vmem:[#allocation3] sm:$0xf] }
  0x25   : > { %v396_v47 = vrot.slane %v394_v43, 1  ;;  %1232 = vmatpush3.bf16.msra.mxu0 %v1321_v38 }
  0x26   : > { %1233 = vmatprep.subr.bf16.mxu0 %v1363_v1  ;;  %v401_v54 = vrot.slane %v399_v52, 1  ;;  %v489_v56 = vsel %vm486_vm12, %v487_v49, %v488_v53 }
  0x27   : > { %v397_v51 = vor.u32 %v396_v47, %v392_v46 }
  0x29   : > { %1234 = vmatpush3.bf16.msra.mxu0 %v1324_v45  ;;  %v402_v55 = vsel %vm390_vm11, %v397_v51, %v401_v54 }
  0x2a   : > { %1235 = vmatprep.subr.bf16.mxu0 %v1363_v1  ;;  %1226 = vmatmul.mubr.msk.bf16.vlgmr.msra.gmra.mxu1 %vm323_vm10, %v402_v55 }
  0x2b   : > { %1257 = vmatprep.mubr.msk.bf16.mxu1 %vm1364_vm0, %v1363_v1  ;;  %1242 = vmatpush3.bf16.msra.mxu1 %v1327_v57 }
  0x2c   : > { %1243 = vmatprep.subr.bf16.mxu1 %v1363_v1 }
  0x2d   : > { %1236 = vmatpush3.bf16.msra.mxu0 %v1325_v50  ;;  %v607_v50 = vld [vmem:[#allocation3 + $0x8] sm:$0x1] }
  0x2e   : > { %1261 = vmatprep.subr.bf16.mxu0 %v1363_v1 }
  0x2f   : > { %1244 = vmatpush3.bf16.msra.mxu1 %v1328_v58 }
  0x30   : > { %1238 = vmatmul.mubr.msk.bf16.vlgmr.msra.gmra.mxu0 %vm323_vm10, %v489_v56  ;;  %1245 = vmatprep.subr.bf16.mxu1 %v1363_v1  ;;  %v1343_v56 = vld [vmem:[%s1648_s3 + $0xb8] sm:$0xff]  }
  0x31   : > { %1277 = vmatprep.mubr.msk.bf16.mxu0 %vm1364_vm0, %v1363_v1  ;;  %1262 = vmatpush3.bf16.msra.mxu0 %v1330_v63 }
  0x32   : > { %1263 = vmatprep.subr.bf16.mxu0 %v1363_v1 }
  0x33   : > { %1246 = vmatpush3.bf16.msra.mxu1 %v1329_v61 }
  0x34   : > { %1247 = vmatprep.subr.bf16.mxu1 %v1363_v1 }
  0x35   : > { %1264 = vmatpush3.bf16.msra.mxu0 %v1332_v2 }
  0x36   : > { %1265 = vmatprep.subr.bf16.mxu0 %v1363_v1 }
  0x37   : > { %1248 = vmatpush3.bf16.msra.mxu1 %v1331_v0 }
  0x38   : > { %1249 = vmatprep.subr.bf16.mxu1 %v1363_v1 }
  0x39   : > { %1266 = vmatpush3.bf16.msra.mxu0 %v1334_v6 }
  0x3a   : > { %1267 = vmatprep.subr.bf16.mxu0 %v1363_v1 }
  0x3b   : > { %1250 = vmatpush3.bf16.msra.mxu1 %v1333_v5  ;;  %v1348_v5 = vld [vmem:[%s1648_s3 + $0xa8] sm:$0xff]  }
  0x3c   : > { %1251 = vmatprep.subr.bf16.mxu1 %v1363_v1 }
  0x3d   : > { %1268 = vmatpush3.bf16.msra.mxu0 %v1336_v8  ;;  %v1350_v8 = vld [vmem:[%s1648_s3 + $0x98] sm:$0xff]  }
  0x3e   : > { %1269 = vmatprep.subr.bf16.mxu0 %v1363_v1 }
  0x3f   : > { %1252 = vmatpush3.bf16.msra.mxu1 %v1335_v7  ;;  %v1349_v7 = vld [vmem:[%s1648_s3 + $0xa0] sm:$0xff]  }
  0x40   : > { %1253 = vmatprep.subr.bf16.mxu1 %v1363_v1 }
  0x41   : > { %1270 = vmatpush3.bf16.msra.mxu0 %v1338_v10  ;;  %v1352_v10 = vld [vmem:[%s1648_s3 + $0x88] sm:$0xff]  }
  0x42   : > { %1271 = vmatprep.subr.bf16.mxu0 %v1363_v1 }
  0x43   : > { %1254 = vmatpush3.bf16.msra.mxu1 %v1337_v9  ;;  %v1351_v9 = vld [vmem:[%s1648_s3 + $0x90] sm:$0xff]  }
  0x44   : > { %1255 = vmatprep.subr.bf16.mxu1 %v1363_v1 }
  0x45   : > { %1272 = vmatpush3.bf16.msra.mxu0 %v1340_v12 }
  0x46   : > { %1273 = vmatprep.subr.bf16.mxu0 %v1363_v1 }
  0x47   : > { %1256 = vmatpush3.bf16.msra.mxu1 %v1339_v11 }
  0x48   : > { %1281 = vmatprep.subr.bf16.mxu1 %v1363_v1 }
  0x49   : > { %1274 = vmatpush3.bf16.msra.mxu0 %v1342_v13  ;;  %v1353_v13 = vld [vmem:[%s1648_s3 + $0x80] sm:$0xff]  }
  0x4a   : > { %1275 = vmatprep.subr.bf16.mxu0 %v1363_v1 }
  0x4d   : > { %1276 = vmatpush3.bf16.msra.mxu0 %v1344_v14 }
  0xe0   : > { %v361_v15 = vpop.f32.mrf.mxu0 }
  0xe1   : > { %v368_v21 = vadd.f32 %v1056_v20, %v361_v15 }
  0xe2   : > { %v1215_v17 = vpop.f32.mrf.mxu0 }
  0xe4   : > { %v364_v18 = vpop.f32.mrf.mxu0 }
  0xe5   : > { %v369_v26 = vadd.f32 %v1056_v20, %v364_v18 }
  0xe6   : > { %v1216_v19 = vpop.f32.mrf.mxu0 }
  0xea   : > { %v464_v22 = vpop.f32.mrf.mxu1 }
  0xeb   : > { %v471_v23 = vadd.f32 %v464_v22, %v368_v21 }
  0xec   : > { %v1227_v24 = vpop.f32.mrf.mxu1 }
  0xee   : > { %v467_v27 = vpop.f32.mrf.mxu1 }
  0xef   : > { %v472_v30 = vadd.f32 %v467_v27, %v369_v26  ;;  %v1094_v26 = vld [vmem:[%s1649_s4] ss:$0 sm:$0xff] }
  0xf0   : > { %v551_v25 = vpop.f32.mrf.mxu0  ;;  %v1228_v31 = vpop.f32.mrf.mxu1 }
  0xf1   : > { %v558_v28 = vadd.f32 %v551_v25, %v471_v23 }
  0xf2   : > { %v1239_v29 = vpop.f32.mrf.mxu0 }
  0xf3   : > { %vm560_vm1 = vcmp.ge.f32.partialorder %v558_v28, 0.0  ;;  %v562_v32 = vmul.f32 0.01, %v558_v28 }
  0xf4   : > { %v554_v33 = vpop.f32.mrf.mxu0 }
  0xf5   : > { %v1584_v34 = vsel %vm560_vm1, %v558_v28, %v562_v32  ;;  %v559_v35 = vadd.f32 %v554_v33, %v472_v30 }
  0xf6   : > { %v1161_v36 = vpack.c.bf16 %v1584_v34, %v1584_v34  ;;  %v1240_v37 = vpop.f32.mrf.mxu0 }
  0xf7   : > { %vm561_vm2 = vcmp.ge.f32.partialorder %v559_v35, 0.0  ;;  %v563_v38 = vmul.f32 0.01, %v559_v35 }
  0xf8   : > { %v582_v39 = vshrl.u32 %v1161_v36, 16  ;;  %v585_v42 = vshll.u32 %v1161_v36, 16 }
  0xf9   : > { %v1588_v40 = vsel %vm561_vm2, %v559_v35, %v563_v38 }
  0xfa   : > { %v584_v41 = vrot.slane %v582_v39, 7  ;;  %v1162_v43 = vpack.c.bf16 %v1588_v40, %v1588_v40 }
  0xfc   : > { %v587_v45 = vor.u32 %v585_v42, %v584_v41  ;;  %v590_v46 = vshrl.u32 %v1162_v43, 16  ;;  %v593_v49 = vshll.u32 %v1162_v43, 16  ;;  %v588_v51 = vrot.slane %v584_v41, 4 }
  0xfe   : > { %v604_v47 = vsel %vm602_vm5, %v587_v45, %v603_v44  ;;  %v592_v48 = vrot.slane %v590_v46, 7 }
  0xff   : > { %605 = vst [vmem:[#allocation3] sm:$0xf] %v604_v47 }
 0x100   : > { %v595_v52 = vor.u32 %v593_v49, %v592_v48  ;;  %v597_v53 = vrot.slane %v592_v48, 4 }
 0x102   : > { %v596_v54 = vsel %vm1458_vm8, %v588_v51, %v595_v52  ;;  %v608_v55 = vsel %vm1519_vm14, %v597_v53, %v607_v50 }
 0x103   : > { %606 = vst [vmem:[#allocation3 + $0x4] sm:$0xf] %v596_v54  ;;  %609 = vst [vmem:[#allocation3 + $0x8] sm:$0x1] %v608_v55 }
 0x106   : > { %v732_v57 = vld [vmem:[#allocation3] sm:$0xf] }
 0x107   : > { %v864_v11 = vld [vmem:[#allocation3] sm:$0xe] }
 0x10a   : > { %v1341_v58 = vld [vmem:[#allocation3] sm:$0xff]   ;;  %v1347_v62 = vld [vmem:[#allocation3 + $0x8] ss:$0 sps:$4 sm:$0x11]  }
 0x10b   : > { %v733_v59 = vld [vmem:[#allocation3 + $0x4] sm:$0xf]  ;;  %1258 = vmatmul.mubr.bf16.vlgmr.msra.gmra.mxu1 %v1341_v58  ;;  %v768_v60 = vshll.u32 %v1347_v62, 16  ;;  %v886_v15 = vrot.slane %v1347_v62, 1 }
 0x10c   : > { %v1120_v61 = vcombine.low %v732_v57, %v733_v59  ;;  %1282 = vmatpush3.bf16.msra.mxu1 %v1343_v56  ;;  %1297 = vmatprep.mubr.msk.bf16.mxu1 %vm1364_vm0, %v1363_v1  ;;  %v1146_v12 = vcombine.low %v864_v11, %v733_v59 }
 0x10d   : > { %1283 = vmatprep.subr.bf16.mxu1 %v1363_v1  ;;  %v770_v4 = vrot.slane %v768_v60, 1 }
 0x10e   : > { %v763_v63 = vshll.u32 %v1120_v61, 16  ;;  %v761_v0 = vshrl.u32 %v1120_v61, 16  ;;  %v885_v14 = vrot.slane %v1146_v12, 1 }
 0x110   : > { %v765_v2 = vrot.slane %v763_v63, 1  ;;  %1284 = vmatpush3.bf16.msra.mxu1 %v1345_v16  ;;  %v887_v17 = vsel %vm486_vm12, %v885_v14, %v886_v15 }
 0x111   : > { %1285 = vmatprep.subr.bf16.mxu1 %v1363_v1 }
 0x112   : > { %v766_v3 = vor.u32 %v765_v2, %v761_v0 }
 0x114   : > { %v771_v6 = vsel %vm390_vm11, %v766_v3, %v770_v4  ;;  %1286 = vmatpush3.bf16.msra.mxu1 %v1348_v5 }
 0x115   : > { %1278 = vmatmul.mubr.bf16.vlgmr.msra.gmra.mxu0 %v771_v6  ;;  %1287 = vmatprep.subr.bf16.mxu1 %v1363_v1 }
 0x118   : > { %1288 = vmatpush3.bf16.msra.mxu1 %v1349_v7 }
 0x119   : > { %1289 = vmatprep.subr.bf16.mxu1 %v1363_v1 }
 0x11c   : > { %1290 = vmatpush3.bf16.msra.mxu1 %v1350_v8 }
 0x11d   : > { %1291 = vmatprep.subr.bf16.mxu1 %v1363_v1 }
 0x120   : > { %1292 = vmatpush3.bf16.msra.mxu1 %v1351_v9 }
 0x121   : > { %1293 = vmatprep.subr.bf16.mxu1 %v1363_v1 }
 0x124   : > { %1294 = vmatpush3.bf16.msra.mxu1 %v1352_v10 }
 0x125   : > { %1295 = vmatprep.subr.bf16.mxu1 %v1363_v1 }
 0x128   : > { %1296 = vmatpush3.bf16.msra.mxu1 %v1353_v13 }
 0x12b   : > { %1298 = vmatmul.mubr.bf16.vlgmr.msra.gmra.mxu1 %v887_v17 }
 0x1cb   : > { %v723_v18 = vpop.f32.mrf.mxu1 }
 0x1cc   : > { %v730_v1 = vadd.f32 %v1094_v26, %v723_v18 }
 0x1cd   : > { %v1259_v19 = vpop.f32.mrf.mxu1 }
 0x1cf   : > { %v726_v20 = vpop.f32.mrf.mxu1 }
 0x1d0   : > { %v731_v29 = vadd.f32 %v1094_v26, %v726_v20 }
 0x1d1   : > { %v1260_v21 = vpop.f32.mrf.mxu1 }
 0x1d5   : > { %v855_v22 = vpop.f32.mrf.mxu0 }
 0x1d6   : > { %v862_v27 = vadd.f32 %v855_v22, %v730_v1 }
 0x1d7   : > { %v1279_v23 = vpop.f32.mrf.mxu0 }
 0x1d9   : > { %v858_v24 = vpop.f32.mrf.mxu0 }
 0x1da   : > { %v863_v32 = vadd.f32 %v858_v24, %v731_v29 }
 0x1db   : > { %v1280_v25 = vpop.f32.mrf.mxu0 }
 0x1eb   : > { %v971_v28 = vpop.f32.mrf.mxu1 }
 0x1ec   : > { %v978_v30 = vadd.f32 %v971_v28, %v862_v27 }
 0x1ed   : > { %v1299_v31 = vpop.f32.mrf.mxu1 }
 0x1ee   : > { %vm980_vm0 = vcmp.ge.f32.partialorder %v978_v30, 0.0  ;;  %v982_v33 = vmul.f32 0.01, %v978_v30 }
 0x1ef   : > { %v974_v35 = vpop.f32.mrf.mxu1 }
 0x1f0   : > { %v984_v36 = vsel %vm980_vm0, %v978_v30, %v982_v33  ;;  %v979_v37 = vadd.f32 %v974_v35, %v863_v32 }
 0x1f1   : > { %v986_v38 = vadd.f32 %v984_v36, %v1584_v34  ;;  %v1300_v39 = vpop.f32.mrf.mxu1 }
 0x1f2   : > { %vm981_vm4 = vcmp.ge.f32.partialorder %v979_v37, 0.0  ;;  %v983_v41 = vmul.f32 0.01, %v979_v37 }
 0x1f3   : > { %988 = vst [vmem:[%s224_s11] sm:$0xff] %v986_v38 }
 0x1f4   : > { %v985_v42 = vsel %vm981_vm4, %v979_v37, %v983_v41 }
 0x1f5   : > { %v987_v43 = vadd.f32 %v985_v42, %v1588_v40 }
 0x1f7   : > { %989 = vst [vmem:[%s224_s11 + $0x8] sm:$0xff] %v987_v43 }
 0x1f8 PF: > { %s15_s18 = sadd.s32 1, %s1361_s18  }
 0x1f9   : > { %p12_p4 = scmp.ge.s32.totalorder %s15_s18, 4  }
 0x1fb   :  { %14 = sbr.rel (!%p12_p4) target bundleno = 1 (0x1), region = 74 }

</bundles_post_ra>
